<compile_context>
chip_gen: v7x
topology: tpu7x:2x2x1
jax: 0.10.0
libtpu: 0.0.40
codegen_flags: <defaults>
</compile_context>

<pallas_src>
import functools

import jax
import jax.numpy as jnp
from jax.experimental import pallas as pl
from jax.experimental.pallas import tpu as pltpu


def _encoder_kernel(x_ref, w_ref, b_ref, eps_ref, out_ref):
    """One batch tile.

    x_ref:   (TB, D)    matmul operand (f32 or bf16)
    w_ref:   (D, 2L)    packed [W_mean^T | W_logvar^T], VMEM-resident
    b_ref:   (1, L)     logvar bias (f32), VMEM-resident
    eps_ref: (TB, L)    reparameterization noise (f32)
    out_ref: (TB, 3L)   packed [z | mu | sigma] (f32)
    """
    L = b_ref.shape[-1]

    # Single fused MXU matmul for both heads; accumulate in f32.
    s = jnp.dot(x_ref[...], w_ref[...], preferred_element_type=jnp.float32)

    mu = s[:, :L]
    logvar = s[:, L:] + b_ref[...]
    sigma = jnp.exp(logvar * 0.5)            # EUP, f32 elementwise (v5e-safe)
    # TODO(synk): optionally draw eps in-kernel via pltpu.prng_seed +
    # pltpu.stateful_normal to drop this input stream (loses bitwise parity
    # with torch.randn, distributionally equivalent only).
    z = mu + sigma * eps_ref[...]

    # One lane-packed output slab -> single output DMA / store stream.
    out_ref[...] = jnp.concatenate([z, mu, sigma], axis=-1).astype(out_ref.dtype)


def pack_encoder_params(w_mean, w_logvar, b_logvar):
    """One-time parameter packing. Keep OUT of the per-call hot path."""
    w_packed = jnp.concatenate(
        [jnp.asarray(w_mean, jnp.float32).T,
         jnp.asarray(w_logvar, jnp.float32).T], axis=1)          # (D, 2L)
    b2d = jnp.asarray(b_logvar, jnp.float32).reshape(1, -1)      # (1, L)
    return w_packed, b2d


@functools.partial(jax.jit, static_argnames=("block_b", "use_bf16_matmul"))
def linear_variational_encoder(x, w_packed, b_logvar2d, eps, *,
                               block_b=512, use_bf16_matmul=False):
    """
    x:           (B, input_dim)
    w_packed:    (input_dim, 2*latent_dim)  from pack_encoder_params
    b_logvar2d:  (1, latent_dim)            from pack_encoder_params
    eps:         (B, latent_dim)
    Returns dict with 'z', 'mu', 'sigma', each (B, latent_dim), float32.
    """
    B, D = x.shape
    two_l = w_packed.shape[1]
    L = two_l // 2

    # Batch tile: as big as the VMEM budget allows (per-step overhead ~0.35us),
    # sublane (8) aligned when tiling.
    if B <= block_b:
        tb = B
    else:
        tb = max(8, (block_b // 8) * 8)
    num_tiles = -(-B // tb)
    b_padded = num_tiles * tb

    x32 = x.astype(jnp.float32)
    eps32 = eps.astype(jnp.float32)
    if b_padded != B:
        pad = b_padded - B
        x32 = jnp.pad(x32, ((0, pad), (0, 0)))
        eps32 = jnp.pad(eps32, ((0, pad), (0, 0)))

    mm_dtype = jnp.bfloat16 if use_bf16_matmul else jnp.float32
    x_in = x32.astype(mm_dtype)
    w_in = w_packed.astype(mm_dtype)

    packed = pl.pallas_call(
        _encoder_kernel,
        out_shape=jax.ShapeDtypeStruct((b_padded, 3 * L), jnp.float32),
        grid=(num_tiles,),
        in_specs=[
            pl.BlockSpec((tb, D), lambda i: (i, 0)),       # x: tiled over batch
            pl.BlockSpec((D, two_l), lambda i: (0, 0)),    # weights: resident
            pl.BlockSpec((1, L), lambda i: (0, 0)),        # bias: resident
            pl.BlockSpec((tb, L), lambda i: (i, 0)),       # eps: tiled over batch
        ],
        out_specs=pl.BlockSpec((tb, 3 * L), lambda i: (i, 0)),
        compiler_params=pltpu.CompilerParams(
            dimension_semantics=("parallel",)),            # shard batch tiles across TCs
    )(x_in, w_in, b_logvar2d, eps32)

    z = packed[:B, :L]
    mu = packed[:B, L:2 * L]
    sigma = packed[:B, 2 * L:]
    return {"z": z, "mu": mu, "sigma": sigma}


if __name__ == "__main__":
    key = jax.random.PRNGKey(0)
    k_x, k_wm, k_wl, k_b, k_eps = jax.random.split(key, 5)

    B, input_dim, latent_dim = 8, 32, 16

    # PyTorch-like uniform(-1/sqrt(D), 1/sqrt(D)) init, deterministic.
    bound = 1.0 / jnp.sqrt(jnp.float32(input_dim))
    w_mean = jax.random.uniform(k_wm, (latent_dim, input_dim),
                                minval=-bound, maxval=bound, dtype=jnp.float32)
    w_logvar = jax.random.uniform(k_wl, (latent_dim, input_dim),
                                  minval=-bound, maxval=bound, dtype=jnp.float32)
    b_logvar = jax.random.uniform(k_b, (latent_dim,),
                                  minval=-bound, maxval=bound, dtype=jnp.float32)

    x = jax.random.normal(k_x, (B, input_dim), dtype=jnp.float32)
    # torch.randn(batch, latent_dim) equivalent, passed in deterministically.
    eps = jax.random.normal(k_eps, (B, latent_dim), dtype=jnp.float32)

    # One-time packing (would be stored as the parameter layout in practice).
    w_packed, b2d = pack_encoder_params(w_mean, w_logvar, b_logvar)

    out = linear_variational_encoder(x, w_packed, b2d, eps)
    jax.block_until_ready(out)

    # Pure-JAX reference (matches the PyTorch forward).
    mu_ref = x @ w_mean.T
    logvar_ref = x @ w_logvar.T + b_logvar
    sigma_ref = jnp.exp(logvar_ref / 2.0)
    z_ref = mu_ref + sigma_ref * eps
    assert jnp.allclose(out["mu"], mu_ref, atol=1e-5)
    assert jnp.allclose(out["sigma"], sigma_ref, atol=1e-5)
    assert jnp.allclose(out["z"], z_ref, atol=1e-5)

    # bf16 MXU-operand path (v6e/v7x peak throughput); looser tolerance.
    out_bf16 = linear_variational_encoder(x, w_packed, b2d, eps,
                                          use_bf16_matmul=True)
    jax.block_until_ready(out_bf16)
    assert jnp.allclose(out_bf16["mu"], mu_ref, rtol=3e-2, atol=3e-2)
    assert jnp.allclose(out_bf16["sigma"], sigma_ref, rtol=3e-2, atol=3e-2)
    assert jnp.allclose(out_bf16["z"], z_ref, rtol=3e-2, atol=3e-2)

    print("KERNEL_OK")
</pallas_src>

<mosaic_0001>
module attributes {stable_mosaic.version = 11 : i64} {
  func.func @_encoder_kernel(%arg0: i32, %arg1: memref<8x32xf32, #tpu.memory_space<vmem>>, %arg2: memref<32x32xf32, #tpu.memory_space<vmem>>, %arg3: memref<1x16xf32, #tpu.memory_space<vmem>>, %arg4: memref<8x16xf32, #tpu.memory_space<vmem>>, %arg5: memref<8x48xf32, #tpu.memory_space<vmem>>) attributes {dimension_semantics = [#tpu.dimension_semantics<parallel>], iteration_bounds = array<i64: 1>, scalar_prefetch = 0 : i64, scratch_operands = 0 : i64, tpu.core_type = #tpu.core_type<tc>, window_params = [{transform_indices = @transform_0, window_bounds = array<i64: 8, 32>}, {pipeline_mode = #tpu.pipeline_mode<synchronous>, transform_indices = @transform_1, window_bounds = array<i64: 32, 32>}, {pipeline_mode = #tpu.pipeline_mode<synchronous>, transform_indices = @transform_2, window_bounds = array<i64: 1, 16>}, {transform_indices = @transform_3, window_bounds = array<i64: 8, 16>}, {transform_indices = @transform_4, window_bounds = array<i64: 8, 48>}]} {
    %c0 = arith.constant 0 : index
    %c0_0 = arith.constant 0 : index
    %0 = vector.load %arg1[%c0, %c0_0] : memref<8x32xf32, #tpu.memory_space<vmem>>, vector<8x32xf32>
    %c0_1 = arith.constant 0 : index
    %c0_2 = arith.constant 0 : index
    %1 = vector.load %arg2[%c0_1, %c0_2] : memref<32x32xf32, #tpu.memory_space<vmem>>, vector<32x32xf32>
    %cst = arith.constant dense<0.000000e+00> : vector<8x32xf32>
    %2 = tpu.matmul %0, %1, %cst {dimension_numbers = #tpu.dot_dimension_numbers<[1], [0], [0], [1], [0, 0, 1, 1], [], []>} : vector<8x32xf32>, vector<32x32xf32>, vector<8x32xf32> -> vector<8x32xf32>
    %3 = vector.extract_strided_slice %2 {offsets = [0, 0], sizes = [8, 16], strides = [1, 1]} : vector<8x32xf32> to vector<8x16xf32>
    %4 = vector.extract_strided_slice %2 {offsets = [0, 16], sizes = [8, 16], strides = [1, 1]} : vector<8x32xf32> to vector<8x16xf32>
    %c0_3 = arith.constant 0 : index
    %c0_4 = arith.constant 0 : index
    %5 = vector.load %arg3[%c0_3, %c0_4] : memref<1x16xf32, #tpu.memory_space<vmem>>, vector<1x16xf32>
    %6 = vector.broadcast %5 : vector<1x16xf32> to vector<8x16xf32>
    %7 = arith.addf %4, %6 : vector<8x16xf32>
    %cst_5 = arith.constant 5.000000e-01 : f32
    %8 = vector.broadcast %cst_5 : f32 to vector<8x16xf32>
    %9 = arith.mulf %7, %8 : vector<8x16xf32>
    %10 = math.exp %9 : vector<8x16xf32>
    %c0_6 = arith.constant 0 : index
    %c0_7 = arith.constant 0 : index
    %11 = vector.load %arg4[%c0_6, %c0_7] : memref<8x16xf32, #tpu.memory_space<vmem>>, vector<8x16xf32>
    %12 = arith.mulf %10, %11 : vector<8x16xf32>
    %13 = arith.addf %3, %12 : vector<8x16xf32>
    %14 = tpu.concatenate %13, %3, %10 in 1 : vector<8x16xf32>, vector<8x16xf32>, vector<8x16xf32> -> vector<8x48xf32>
    %c0_8 = arith.constant 0 : index
    %c0_9 = arith.constant 0 : index
    %15 = vector.load %arg5[%c0_8, %c0_9] : memref<8x48xf32, #tpu.memory_space<vmem>>, vector<8x48xf32>
    tpu.vector_store %arg5[%c0_8, %c0_9], %14 {strides = array<i32>} : memref<8x48xf32, #tpu.memory_space<vmem>>, vector<8x48xf32>,
    return
  }
  func.func @transform_0(%arg0: i32) -> (i32, i32) {
    %c0_i32 = arith.constant 0 : i32
    %c0_i32_0 = arith.constant 0 : i32
    return %arg0, %c0_i32 : i32, i32
  }
  func.func @transform_1(%arg0: i32) -> (i32, i32) {
    %c0_i32 = arith.constant 0 : i32
    %c0_i32_0 = arith.constant 0 : i32
    %c0_i32_1 = arith.constant 0 : i32
    return %c0_i32, %c0_i32_0 : i32, i32
  }
  func.func @transform_2(%arg0: i32) -> (i32, i32) {
    %c0_i32 = arith.constant 0 : i32
    %c0_i32_0 = arith.constant 0 : i32
    %c0_i32_1 = arith.constant 0 : i32
    return %c0_i32, %c0_i32_0 : i32, i32
  }
  func.func @transform_3(%arg0: i32) -> (i32, i32) {
    %c0_i32 = arith.constant 0 : i32
    %c0_i32_0 = arith.constant 0 : i32
    return %arg0, %c0_i32 : i32, i32
  }
  func.func @transform_4(%arg0: i32) -> (i32, i32) {
    %c0_i32 = arith.constant 0 : i32
    %c0_i32_0 = arith.constant 0 : i32
    return %arg0, %c0_i32 : i32, i32
  }
}

</mosaic_0001>

<bundles_post_ra>
// kernel: linear_variational_encoder.1
= control target key start
LH: loop header
LB: loop body
LE: loop exit
PB: predicated region body
PF: predicated region fallthrough
CT: control target
= control target key end

     0   :  { %9 = vsyncpa [#allocation3], 0  ;;  %s324_s0 = inlined_call_operand.hbm [shape: f32[8,32], index: 0, kind: input, shape index: {}]   ;;  %s325_s1 = inlined_call_operand.hbm [shape: f32[32,32], index: 1, kind: input, shape index: {}]   ;;  %s326_s2 = inlined_call_operand.vmem [shape: f32[1,16], index: 2, kind: input, shape index: {}]   ;;  %s327_s3 = inlined_call_operand.vmem [shape: f32[8,16], index: 3, kind: input, shape index: {}]   ;;  %s328_s4 = inlined_call_operand.vmem [shape: f32[8,48], index: 4, kind: output, shape index: {}]  }
   0x1   :  { %10 = vsyncpa [#allocation5], 0  ;;  %s248_s15 = smov [#allocation2]   ;;  %s249_s17 = smov [#allocation4]  }
   0x2   :  { %s17_s16 = sshll.u32 %s248_s15, 4  ;;  %s26_s18 = sshll.u32 %s249_s17, 4  ;;  %s18_s16 = int_to_ptr.vmem [resolvable:$true] %s17_s16  ;;  %s282_s18 = int_to_ptr.vmem [resolvable:$true] %s26_s18 }
   0x3   :  { %s200_s21 = scalar_lea.hbm %s324_s0, 128 }
   0x4   :  { %p201_p0 = scmp.ne.s32.totalorder %s324_s0, %s200_s21  ;;  %p204_p1 = scmp.lt.u32.totalorder %s200_s21, %s324_s0 }
   0x6   :  { %p206_p2 = pnand %p204_p1, %p201_p0 }
   0x8   :  { %209 = shalt.err (!%p206_p2)
}
   0x9   :  { %s210_s26 = scalar_lea.vmem %s18_s16, 128  ;;  %p215_p4 = scmp.lt.s32.totalorder %s18_s16, %s18_s16 }
   0xa   :  { %p211_p3 = scmp.ne.s32.totalorder %s18_s16, %s210_s26  ;;  %p216_p5 = scmp.lt.s32.totalorder %s210_s26, %s210_s26 }
   0xc   :  { %p217_p6 = por %p216_p5, %p215_p4 }
   0xe   :  { %p218_p7 = pnand %p217_p6, %p211_p3 }
  0x10   :  { %221 = shalt.err (!%p218_p7)
}
  0x11   :  { %20 = dma.hbm_to_vmem [thread:$0]  %s324_s0, 128, %s18_s16, [#allocation3]  }
  0x12   :  { %s222_s5 = scalar_lea.hbm %s325_s1, 512 }
  0x13   :  { %p223_p8 = scmp.ne.s32.totalorder %s325_s1, %s222_s5  ;;  %p226_p9 = scmp.lt.u32.totalorder %s222_s5, %s325_s1 }
  0x15   :  { %p228_p10 = pnand %p226_p9, %p223_p8 }
  0x17   :  { %231 = shalt.err (!%p228_p10)
}
  0x18   :  { %s232_s10 = scalar_lea.vmem %s282_s18, 512  ;;  %p237_p12 = scmp.lt.s32.totalorder %s282_s18, %s282_s18 }
  0x19   :  { %p233_p11 = scmp.ne.s32.totalorder %s282_s18, %s232_s10  ;;  %p238_p13 = scmp.lt.s32.totalorder %s232_s10, %s232_s10 }
  0x1b   :  { %p239_p0 = por %p238_p13, %p237_p12 }
  0x1d   :  { %p240_p1 = pnand %p239_p0, %p233_p11 }
  0x1f   :  { %243 = shalt.err (!%p240_p1)
}
  0x20   :  { %s250_s0 = smov 128   ;;  %s251_s11 = smov 8  }
  0x21   :  { %32 = dma.hbm_to_vmem [thread:$0]  %s325_s1, 512, %s282_s18, [#allocation5], %s250_s0, %s250_s0, %s251_s11  }
  0x22   :  { %244 = dma.done.wait [#allocation3], 128  }
  0x23   :  { %245 = vsyncadd [#allocation3], 4294967168 }
  0x24   :  { %246 = dma.done.wait [#allocation5], 512  }
  0x25   :  { %247 = vsyncadd [#allocation5], 4294966784  ;;  %v252_v0 = vmov 0.0|0.0   ;;  %vm253_vm0 = vmmov 0   ;;  %v254_v1 = vmov 0.0   ;;  %v44_v2 = vld [vmem:[#allocation4] sm:$0xff] }
  0x26   :  { %183 = vmatprep.subr.bf16.mxu0 %v252_v0  ;;  %180 = vmatprep.mubr.msk.f32.mxu0 %vm253_vm0, %v254_v1  ;;  %v45_v3 = vld [vmem:[#allocation4 + $0x8] sm:$0xff]  ;;  %v46_v4 = vld [vmem:[#allocation4 + $0x10] sm:$0xff]  ;;  %v47_v6 = vld [vmem:[#allocation4 + $0x18] sm:$0xff]  ;;  %s255_s16 = smov 16   ;;  %vm48_vm1 = vcmask 261120   ;;  %vm154_vm2 = vcmask 130048  }
  0x27   :  { %v184_v5 = vpack.c.bf16 %v45_v3, %v44_v2  ;;  %v166_v7 = vld [vmem:[%s326_s2] ss:$0 sm:$0xff]  ;;  %v187_v8 = vpack.c.bf16 %v47_v6, %v46_v4  ;;  %v43_v10 = vld [vmem:[#allocation2] sm:$0xff]  ;;  %s256_s2 = smov 112   ;;  %vm157_vm3 = vcmask 392192  }
  0x28   :  { %128 = vrot.lane.b32.xlu0 %v166_v7, %s255_s16  ;;  %v135_v9 = vld [vmem:[%s327_s3] sm:$0xff] }
  0x29   :  { %185 = vmatpush3.bf16.msra.mxu0 %v184_v5 }
  0x2a   :  { %186 = vmatprep.subr.bf16.mxu0 %v252_v0 }
  0x2c   :  { %137 = vrot.lane.b32.xlu0 %v135_v9, %s255_s16 }
  0x2d   :  { %188 = vmatpush3.bf16.msra.mxu0 %v187_v8 }
  0x30   :  { %181 = vmatmul.mubr.msk.f32.vlgmr.msra.gmra.mrb[0].mxu0 %vm48_vm1, %v43_v10 }
  0x9a   :  { %v129_v11 = vpop.permute.xlu0 %128 }
  0x9e   :  { %v138_v17 = vpop.permute.xlu0 %137 }
 0x103   :  { %v118_v12 = vpop.f32.mrb[0].mxu0 }
 0x104   :  { %v131_v13 = vadd.f32 %v129_v11, %v118_v12  ;;  %v182_v14 = vpop.f32.mrb[1].mxu0 }
 0x106   :  { %v132_v15 = vmul.f32 0.5, %v131_v13 }
 0x108   :  { %v133_v16 = vmul.f32 1.442695, %v132_v15 }
 0x10a   :  { %198 = vpow2.f32 %v133_v16 }
 0x114   :  { %v199_v18 = vpop.eup %198 }
 0x115   :  { %v140_v19 = vmul.f32 %v199_v18, %v138_v17  ;;  %151 = vrot.lane.b32.xlu0 %v199_v18, %s255_s16 }
 0x117   :  { %142 = vrot.lane.b32.xlu1 %v140_v19, %s256_s2 }
 0x11b   :  { %147 = vrot.lane.b32.xlu1 %v118_v12, %s255_s16 }
 0x187   :  { %v152_v23 = vpop.permute.xlu0 %151 }
 0x189   :  { %v143_v20 = vpop.permute.xlu1 %142 }
 0x18a   :  { %v145_v21 = vadd.f32 %v143_v20, %v118_v12 }
 0x18d   :  { %v148_v22 = vpop.permute.xlu1 %147 }
 0x18e   :  { %v155_v24 = vsel %vm154_vm2, %v145_v21, %v148_v22 }
 0x18f   :  { %v156_v25 = vsel %vm48_vm1, %v155_v24, %v152_v23 }
 0x190   :  { %158 = vst.msk [vmem:[%s328_s4] sm:$0xff] %vm157_vm3, %v156_v25 }
 0x191   :  { %163 = vsyncpa [#allocation3], 1 }
 0x192   :  { %164 = vsyncpa [#allocation5], 1 }

</bundles_post_ra>
